<compile_context>
chip_gen: v7x
topology: tpu7x:2x2x1
jax: 0.10.0
libtpu: 0.0.40
codegen_flags: <defaults>
</compile_context>

<pallas_src>
import functools
import math

import jax
import jax.numpy as jnp
import numpy as np
from jax import lax
from jax.experimental import pallas as pl
from jax.experimental.pallas import tpu as pltpu


def _largest_divisor_tile(n, target, mult):
    """Largest divisor of n that is <= target and a multiple of `mult` (else n)."""
    if n <= target:
        return n
    for t in range(target, 0, -1):
        if n % t == 0 and t % mult == 0:
            return t
    return n


# ---------------------------------------------------------------------------
# Kernel 1: fused period-based dependency discovery.
#   corr_mean[b, tau] = (1/(H*E)) * sum_{h,e} sum_s q[b,(s+tau)%L,h,e] * k[b,s,h,e]
# which equals mean_{h,e} irfft(rfft(q)*conj(rfft(k)))[tau]  (the 1/L factors cancel).
# ---------------------------------------------------------------------------
def _corr_mean_kernel(q_ref, k_ref, o_ref, *, n_stages, inv_c):
    r = pl.program_id(1)                       # row-tile index (reduction axis)
    tm = k_ref.shape[1]
    L = q_ref.shape[1]

    q = q_ref[0]                               # (L,  C) io dtype
    k = k_ref[0]                               # (tm, C) io dtype

    # MXU matmul, contracting the last axis of both operands (no q transpose copy):
    #   g[p, i] = sum_c k[p, c] * q[i, c]      (f32 accumulation)
    g = lax.dot_general(k, q, dimension_numbers=(((1,), (1,)), ((), ())),
                        preferred_element_type=jnp.float32)        # (tm, L)

    # Shear: row with global index s must be circularly left-rotated by s so that
    # column tau holds g[s, (s + tau) % L].  Barrel shifter over the bits of s.
    rows = r * tm + lax.broadcasted_iota(jnp.int32, (tm, L), 0)     # global row index
    w = g
    for j in range(n_stages):
        d = 1 << j                                                  # static, d < L
        rolled = jnp.concatenate([w[:, d:], w[:, :d]], axis=1)      # left-roll by d
        w = jnp.where((rows & d) != 0, rolled, w)

    partial = jnp.sum(w, axis=0, keepdims=True) * inv_c             # (1, L) f32

    @pl.when(r == 0)
    def _():
        o_ref[...] = jnp.zeros_like(o_ref)
    o_ref[0] += partial


def circular_corr_mean(q_blc, k_blc, *, row_tile=None,
                       vmem_limit_bytes=64 * 1024 * 1024):
    """q/k: (B, L, H*E) -> (B, L) f32 head/channel-mean circular autocorrelation."""
    B, L, C = q_blc.shape
    assert k_blc.shape == (B, L, C)

    tm = _largest_divisor_tile(L, 256, 8) if row_tile is None else row_tile
    if L % tm != 0 or (tm != L and tm % 8 != 0):
        tm = L
    n_rows = L // tm
    n_stages = (L - 1).bit_length()

    out = pl.pallas_call(
        functools.partial(_corr_mean_kernel, n_stages=n_stages, inv_c=1.0 / C),
        out_shape=jax.ShapeDtypeStruct((B, 1, L), jnp.float32),
        grid=(B, n_rows),
        in_specs=[
            pl.BlockSpec((1, L, C), lambda b, r: (b, 0, 0)),     # q (resident per b)
            pl.BlockSpec((1, tm, C), lambda b, r: (b, r, 0)),    # k row tile
        ],
        out_specs=pl.BlockSpec((1, 1, L), lambda b, r: (b, 0, 0)),  # accumulator
        compiler_params=pltpu.CompilerParams(
            dimension_semantics=("parallel", "arbitrary"),
            vmem_limit_bytes=vmem_limit_bytes),
    )(q_blc, k_blc)
    return out[:, 0, :]


# ---------------------------------------------------------------------------
# Kernel 2: time-delay aggregation (delays/weights are per-batch, shared over heads)
#   out[b, t, c] = sum_i v[b, (t + delay[b, i]) % L, c] * w[b, i],   c = (h, d) folded.
# Covers both the training "roll" path and the inference "gather on doubled values"
# path (identical for 0 <= delay < L).
# ---------------------------------------------------------------------------
def _agg_kernel(v_ref, idx_ref, w_ref, o_ref, v2_ref, *, top_k):
    b = pl.program_id(0)
    L = v_ref.shape[1]
    v = v_ref[0]                                           # (L, tC) io dtype

    # doubled values: circular shift -> single dynamic sublane slice per delay
    v2_ref[0:L, :] = v
    v2_ref[L:2 * L, :] = v

    # fused weighted sum (f32 accumulation), one lane-dense store at the end
    acc = v2_ref[pl.ds(idx_ref[b, 0], L), :].astype(jnp.float32) * w_ref[b, 0]
    for i in range(1, top_k):                              # top_k is small & static
        acc = acc + v2_ref[pl.ds(idx_ref[b, i], L), :].astype(jnp.float32) * w_ref[b, i]
    o_ref[0] = acc.astype(o_ref.dtype)


def time_delay_agg(v_blc, delays_bk, weights_bk, top_k, *, out_dtype=None,
                   channel_tile=None, vmem_limit_bytes=64 * 1024 * 1024):
    """v: (B, L, H*D), delays/weights: (B, top_k) -> (B, L, H*D)."""
    B, L, Cv = v_blc.shape
    out_dtype = v_blc.dtype if out_dtype is None else out_dtype

    tc = _largest_divisor_tile(Cv, 512, 128) if channel_tile is None else channel_tile
    if Cv % tc != 0 or (tc != Cv and tc % 128 != 0):
        tc = Cv
    n_ch = Cv // tc

    vspec = pl.BlockSpec((1, L, tc), lambda b, c: (b, 0, c))
    return pl.pallas_call(
        functools.partial(_agg_kernel, top_k=top_k),
        out_shape=jax.ShapeDtypeStruct((B, L, Cv), out_dtype),
        grid=(B, n_ch),
        in_specs=[
            vspec,
            pl.BlockSpec(memory_space=pltpu.MemorySpace.SMEM),   # delays  (B, top_k) i32
            pl.BlockSpec(memory_space=pltpu.MemorySpace.SMEM),   # weights (B, top_k) f32
        ],
        out_specs=vspec,
        scratch_shapes=[pltpu.VMEM((2 * L, tc), v_blc.dtype)],
        compiler_params=pltpu.CompilerParams(
            dimension_semantics=("parallel", "parallel"),
            vmem_limit_bytes=vmem_limit_bytes),
    )(v_blc, delays_bk, weights_bk)


# ---------------------------------------------------------------------------
# Full forward (mirrors DSAutoCorrelation.forward with output_attention=False;
# mask_flag / attn_mask / dropout are no-ops in the torch forward as well).
# ---------------------------------------------------------------------------
def ds_autocorrelation_forward(queries, keys, values, attn_mask=None,
                               tau=None, delta=None, factor=1, training=True,
                               io_dtype=jnp.bfloat16, out_dtype=None, row_tile=None):
    # TODO(synk): output_attention=True would need the full (B, H, E, L) corr tensor,
    # which is intentionally never materialized (only its head/channel mean is).
    B, L, H, E = queries.shape
    _, S, _, D = values.shape
    out_dtype = values.dtype if out_dtype is None else out_dtype

    if L > S:
        values = jnp.concatenate(
            [values, jnp.zeros((B, L - S, H, D), values.dtype)], axis=1)
        keys = jnp.concatenate(
            [keys, jnp.zeros((B, L - S, H, E), keys.dtype)], axis=1)
    else:
        values = values[:, :L]
        keys = keys[:, :L]

    # fold heads into the lane axis (free reshapes, no HBM transposes); cast in the
    # wrapper so the kernels stream io_dtype (bf16 halves DMA on v5e/v6e/v7x).
    q_f = queries.astype(io_dtype).reshape(B, L, H * E)
    k_f = keys.astype(io_dtype).reshape(B, L, H * E)
    v_f = values.astype(io_dtype).reshape(B, L, H * D)

    # fused corr + mean over (head, channel)   -> (B, L) f32
    mean_value = circular_corr_mean(q_f, k_f, row_tile=row_tile)
    # NOTE: tau/delta are per-batch de-stationary scalars in DSAutoCorrelation; the
    # (H, E) mean is linear, so applying them after the mean is exactly equivalent.
    if tau is not None:
        mean_value = mean_value * jnp.reshape(tau, (-1, 1)).astype(jnp.float32)
    if delta is not None:
        mean_value = mean_value + jnp.reshape(delta, (-1, 1)).astype(jnp.float32)

    top_k = max(1, min(int(factor * math.log(L)), L))
    if training:
        # shared top-k delays (top-k of the batch-mean autocorrelation)
        index = jax.lax.top_k(jnp.mean(mean_value, axis=0), top_k)[1]   # (top_k,)
        weights = mean_value[:, index]                                  # (B, top_k)
        delays = jnp.broadcast_to(index[None, :], (B, top_k))
    else:
        weights, delays = jax.lax.top_k(mean_value, top_k)              # (B, top_k)
    tmp_corr = jax.nn.softmax(weights, axis=-1)

    agg = time_delay_agg(v_f, delays.astype(jnp.int32),
                         tmp_corr.astype(jnp.float32), top_k,
                         out_dtype=out_dtype)                           # (B, L, H*D)
    V = agg.reshape(B, L, H, D)
    return V, None                                                      # output_attention=False


# ---------------------------------------------------------------------------
# Pure-JAX FFT reference (training path) for verification
# ---------------------------------------------------------------------------
def reference_forward(queries, keys, values, factor=1):
    B, L, H, E = queries.shape
    values = values[:, :L]
    keys = keys[:, :L]
    q = jnp.transpose(queries, (0, 2, 3, 1))
    k = jnp.transpose(keys, (0, 2, 3, 1))
    v = jnp.transpose(values, (0, 2, 3, 1))
    corr = jnp.fft.irfft(jnp.fft.rfft(q, axis=-1) * jnp.conj(jnp.fft.rfft(k, axis=-1)),
                         n=L, axis=-1)
    mean_value = jnp.mean(jnp.mean(corr, axis=1), axis=1)
    top_k = int(factor * math.log(L))
    index = jax.lax.top_k(jnp.mean(mean_value, axis=0), top_k)[1]
    weights = jnp.stack([mean_value[:, index[i]] for i in range(top_k)], axis=-1)
    tmp_corr = jax.nn.softmax(weights, axis=-1)
    delays_agg = jnp.zeros_like(v)
    for i in range(top_k):
        pattern = jnp.roll(v, -int(index[i]), axis=-1)
        delays_agg = delays_agg + pattern * tmp_corr[:, i][:, None, None, None]
    return jnp.transpose(delays_agg, (0, 3, 1, 2))


if __name__ == "__main__":
    # DSAutoCorrelation has no learnable parameters (only an unused Dropout).
    key = jax.random.PRNGKey(0)
    kq, kk, kv = jax.random.split(key, 3)
    B, L, H, E, D = 2, 16, 4, 8, 8
    queries = jax.random.normal(kq, (B, L, H, E), jnp.float32)
    keys = jax.random.normal(kk, (B, L, H, E), jnp.float32)
    values = jax.random.normal(kv, (B, L, H, D), jnp.float32)

    # --- f32 I/O training path, checked against the pure-JAX FFT reference ---------
    V, attn = ds_autocorrelation_forward(queries, keys, values, factor=1,
                                         training=True, io_dtype=jnp.float32)
    V = jax.block_until_ready(V)
    assert V.shape == (B, L, H, D) and attn is None
    V_ref = jax.block_until_ready(reference_forward(queries, keys, values, factor=1))
    np.testing.assert_allclose(np.asarray(V), np.asarray(V_ref), rtol=1e-2, atol=1e-2)

    # --- fused corr-mean kernel vs FFT autocorrelation mean; row_tile=8 also
    #     exercises the row-tiled accumulator path (2 reduction steps per batch) -----
    q_f = queries.reshape(B, L, H * E)
    k_f = keys.reshape(B, L, H * E)
    mean_pallas = jax.block_until_ready(circular_corr_mean(q_f, k_f, row_tile=8))
    qp = jnp.transpose(queries, (0, 2, 3, 1))
    kp = jnp.transpose(keys, (0, 2, 3, 1))
    corr_fft = jnp.fft.irfft(jnp.fft.rfft(qp, axis=-1) * jnp.conj(jnp.fft.rfft(kp, axis=-1)),
                             n=L, axis=-1)
    mean_fft = jnp.mean(corr_fft, axis=(1, 2))
    np.testing.assert_allclose(np.asarray(mean_pallas), np.asarray(mean_fft),
                               rtol=2e-2, atol=2e-2)

    # --- default bf16 HBM-I/O path (per perf review): shape / finiteness check only,
    #     since bf16 rounding may legitimately reorder near-tied top-k lags ----------
    V_bf16, _ = ds_autocorrelation_forward(queries, keys, values, factor=1, training=True)
    V_bf16 = jax.block_until_ready(V_bf16)
    assert V_bf16.shape == (B, L, H, D)
    assert bool(jnp.all(jnp.isfinite(V_bf16.astype(jnp.float32))))

    # --- inference path (per-batch top-k) through the same kernels ------------------
    V_inf, _ = ds_autocorrelation_forward(queries, keys, values, factor=1,
                                          training=False, io_dtype=jnp.float32)
    V_inf = jax.block_until_ready(V_inf)
    assert V_inf.shape == (B, L, H, D)
    assert bool(jnp.all(jnp.isfinite(V_inf)))

    print("KERNEL_OK")
</pallas_src>

<mosaic_0001>
module attributes {stable_mosaic.version = 11 : i64} {
  func.func @_corr_mean_kernel(%arg0: i32, %arg1: i32, %arg2: memref<1x16x32xf32, #tpu.memory_space<vmem>>, %arg3: memref<1x16x32xf32, #tpu.memory_space<vmem>>, %arg4: memref<1x1x16xf32, #tpu.memory_space<vmem>>) attributes {dimension_semantics = [#tpu.dimension_semantics<parallel>, #tpu.dimension_semantics<arbitrary>], iteration_bounds = array<i64: 2, 1>, scalar_prefetch = 0 : i64, scratch_operands = 0 : i64, tpu.core_type = #tpu.core_type<tc>, window_params = [{transform_indices = @transform_0, window_bounds = array<i64: 1, 16, 32>}, {transform_indices = @transform_1, window_bounds = array<i64: 1, 16, 32>}, {transform_indices = @transform_2, window_bounds = array<i64: 1, 1, 16>}]} {
    %c0 = arith.constant 0 : index
    %c0_0 = arith.constant 0 : index
    %c0_1 = arith.constant 0 : index
    %0 = vector.load %arg2[%c0, %c0_0, %c0_1] : memref<1x16x32xf32, #tpu.memory_space<vmem>>, vector<1x16x32xf32>
    %1 = vector.shape_cast %0 : vector<1x16x32xf32> to vector<16x32xf32>
    %c0_2 = arith.constant 0 : index
    %c0_3 = arith.constant 0 : index
    %c0_4 = arith.constant 0 : index
    %2 = vector.load %arg3[%c0_2, %c0_3, %c0_4] : memref<1x16x32xf32, #tpu.memory_space<vmem>>, vector<1x16x32xf32>
    %3 = vector.shape_cast %2 : vector<1x16x32xf32> to vector<16x32xf32>
    %cst = arith.constant dense<0.000000e+00> : vector<16x16xf32>
    %4 = tpu.matmul %3, %1, %cst {dimension_numbers = #tpu.dot_dimension_numbers<[1], [1], [0], [0], [0, 0, 1, 0], [], []>} : vector<16x32xf32>, vector<16x32xf32>, vector<16x16xf32> -> vector<16x16xf32>
    %c16_i32 = arith.constant 16 : i32
    %5 = arith.muli %arg1, %c16_i32 : i32
    %6 = tpu.iota {dimensions = array<i32: 0>} : vector<16x16xi32>
    %7 = vector.broadcast %5 : i32 to vector<16x16xi32>
    %8 = arith.addi %7, %6 : vector<16x16xi32>
    %9 = vector.extract_strided_slice %4 {offsets = [0, 1], sizes = [16, 15], strides = [1, 1]} : vector<16x16xf32> to vector<16x15xf32>
    %10 = vector.extract_strided_slice %4 {offsets = [0, 0], sizes = [16, 1], strides = [1, 1]} : vector<16x16xf32> to vector<16x1xf32>
    %11 = tpu.concatenate %9, %10 in 1 : vector<16x15xf32>, vector<16x1xf32> -> vector<16x16xf32>
    %c1_i32 = arith.constant 1 : i32
    %12 = vector.broadcast %c1_i32 : i32 to vector<16x16xi32>
    %13 = arith.andi %8, %12 : vector<16x16xi32>
    %c0_i32 = arith.constant 0 : i32
    %14 = vector.broadcast %c0_i32 : i32 to vector<16x16xi32>
    %15 = arith.cmpi ne, %13, %14 : vector<16x16xi32>
    %16 = arith.select %15, %11, %4 : vector<16x16xi1>, vector<16x16xf32>
    %17 = vector.extract_strided_slice %16 {offsets = [0, 2], sizes = [16, 14], strides = [1, 1]} : vector<16x16xf32> to vector<16x14xf32>
    %18 = vector.extract_strided_slice %16 {offsets = [0, 0], sizes = [16, 2], strides = [1, 1]} : vector<16x16xf32> to vector<16x2xf32>
    %19 = tpu.concatenate %17, %18 in 1 : vector<16x14xf32>, vector<16x2xf32> -> vector<16x16xf32>
    %c2_i32 = arith.constant 2 : i32
    %20 = vector.broadcast %c2_i32 : i32 to vector<16x16xi32>
    %21 = arith.andi %8, %20 : vector<16x16xi32>
    %c0_i32_5 = arith.constant 0 : i32
    %22 = vector.broadcast %c0_i32_5 : i32 to vector<16x16xi32>
    %23 = arith.cmpi ne, %21, %22 : vector<16x16xi32>
    %24 = arith.select %23, %19, %16 : vector<16x16xi1>, vector<16x16xf32>
    %25 = vector.extract_strided_slice %24 {offsets = [0, 4], sizes = [16, 12], strides = [1, 1]} : vector<16x16xf32> to vector<16x12xf32>
    %26 = vector.extract_strided_slice %24 {offsets = [0, 0], sizes = [16, 4], strides = [1, 1]} : vector<16x16xf32> to vector<16x4xf32>
    %27 = tpu.concatenate %25, %26 in 1 : vector<16x12xf32>, vector<16x4xf32> -> vector<16x16xf32>
    %c4_i32 = arith.constant 4 : i32
    %28 = vector.broadcast %c4_i32 : i32 to vector<16x16xi32>
    %29 = arith.andi %8, %28 : vector<16x16xi32>
    %c0_i32_6 = arith.constant 0 : i32
    %30 = vector.broadcast %c0_i32_6 : i32 to vector<16x16xi32>
    %31 = arith.cmpi ne, %29, %30 : vector<16x16xi32>
    %32 = arith.select %31, %27, %24 : vector<16x16xi1>, vector<16x16xf32>
    %33 = vector.extract_strided_slice %32 {offsets = [0, 8], sizes = [16, 8], strides = [1, 1]} : vector<16x16xf32> to vector<16x8xf32>
    %34 = vector.extract_strided_slice %32 {offsets = [0, 0], sizes = [16, 8], strides = [1, 1]} : vector<16x16xf32> to vector<16x8xf32>
    %35 = tpu.concatenate %33, %34 in 1 : vector<16x8xf32>, vector<16x8xf32> -> vector<16x16xf32>
    %c8_i32 = arith.constant 8 : i32
    %36 = vector.broadcast %c8_i32 : i32 to vector<16x16xi32>
    %37 = arith.andi %8, %36 : vector<16x16xi32>
    %c0_i32_7 = arith.constant 0 : i32
    %38 = vector.broadcast %c0_i32_7 : i32 to vector<16x16xi32>
    %39 = arith.cmpi ne, %37, %38 : vector<16x16xi32>
    %40 = arith.select %39, %35, %32 : vector<16x16xi1>, vector<16x16xf32>
    %cst_8 = arith.constant dense<0.000000e+00> : vector<16xf32>
    %41 = vector.multi_reduction <add>, %40, %cst_8 [0] : vector<16x16xf32> to vector<16xf32>
    %42 = vector.shape_cast %41 : vector<16xf32> to vector<1x16xf32>
    %cst_9 = arith.constant 3.125000e-02 : f32
    %43 = vector.broadcast %cst_9 : f32 to vector<1x16xf32>
    %44 = arith.mulf %42, %43 : vector<1x16xf32>
    %c0_i32_10 = arith.constant 0 : i32
    %45 = arith.cmpi eq, %arg1, %c0_i32_10 : i32
    %46 = arith.extui %45 : i1 to i32
    %c0_i32_11 = arith.constant 0 : i32
    %47 = arith.cmpi ne, %46, %c0_i32_11 : i32
    scf.if %47 {
      %cst_18 = arith.constant 0.000000e+00 : f32
      %54 = vector.broadcast %cst_18 : f32 to vector<1x1x16xf32>
      %c0_19 = arith.constant 0 : index
      %c0_20 = arith.constant 0 : index
      %c0_21 = arith.constant 0 : index
      %55 = vector.load %arg4[%c0_19, %c0_20, %c0_21] : memref<1x1x16xf32, #tpu.memory_space<vmem>>, vector<1x1x16xf32>
      tpu.vector_store %arg4[%c0_19, %c0_20, %c0_21], %54 {strides = array<i32>} : memref<1x1x16xf32, #tpu.memory_space<vmem>>, vector<1x1x16xf32>,
    } else {
    }
    %c0_12 = arith.constant 0 : index
    %c0_13 = arith.constant 0 : index
    %c0_14 = arith.constant 0 : index
    %48 = vector.load %arg4[%c0_12, %c0_13, %c0_14] : memref<1x1x16xf32, #tpu.memory_space<vmem>>, vector<1x1x16xf32>
    %49 = vector.shape_cast %48 : vector<1x1x16xf32> to vector<1x16xf32>
    %50 = arith.addf %49, %44 : vector<1x16xf32>
    %c0_15 = arith.constant 0 : index
    %c0_16 = arith.constant 0 : index
    %c0_17 = arith.constant 0 : index
    %51 = vector.load %arg4[%c0_15, %c0_16, %c0_17] : memref<1x1x16xf32, #tpu.memory_space<vmem>>, vector<1x1x16xf32>
    %52 = vector.shape_cast %51 : vector<1x1x16xf32> to vector<1x16xf32>
    %53 = vector.shape_cast %50 : vector<1x16xf32> to vector<1x1x16xf32>
    tpu.vector_store %arg4[%c0_15, %c0_16, %c0_17], %53 {strides = array<i32>} : memref<1x1x16xf32, #tpu.memory_space<vmem>>, vector<1x1x16xf32>,
    return
  }
  func.func @transform_0(%arg0: i32, %arg1: i32) -> (i32, i32, i32) {
    %c0_i32 = arith.constant 0 : i32
    %c0_i32_0 = arith.constant 0 : i32
    %c0_i32_1 = arith.constant 0 : i32
    return %arg0, %c0_i32, %c0_i32_0 : i32, i32, i32
  }
  func.func @transform_1(%arg0: i32, %arg1: i32) -> (i32, i32, i32) {
    %c0_i32 = arith.constant 0 : i32
    %c0_i32_0 = arith.constant 0 : i32
    return %arg0, %arg1, %c0_i32 : i32, i32, i32
  }
  func.func @transform_2(%arg0: i32, %arg1: i32) -> (i32, i32, i32) {
    %c0_i32 = arith.constant 0 : i32
    %c0_i32_0 = arith.constant 0 : i32
    %c0_i32_1 = arith.constant 0 : i32
    return %arg0, %c0_i32, %c0_i32_0 : i32, i32, i32
  }
}

</mosaic_0001>

<bundles_post_ra>
// kernel: tpu_custom_call.1
= control target key start
LH: loop header
LB: loop body
LE: loop exit
PB: predicated region body
PF: predicated region fallthrough
CT: control target
= control target key end

     0   :  { %7 = vsyncpa [#allocation3], 0  ;;  %s1082_s0 = inlined_call_operand.hbm [shape: f32[2,16,32], index: 0, kind: input, shape index: {}]   ;;  %s1083_s1 = inlined_call_operand.hbm [shape: f32[2,16,32], index: 1, kind: input, shape index: {}]   ;;  %s1084_s2 = inlined_call_operand.hbm [shape: f32[2,1,16], index: 2, kind: output, shape index: {}]  }
   0x1   :  { %9 = vsyncpa [#allocation3 + $0x1], 0 }
   0x2   :  { %10 = vsyncpa [#allocation6], 0 }
   0x3   :  { %12 = vsyncpa [#allocation6 + $0x1], 0 }
   0x4   :  { %13 = vsyncpa [#allocation4], 0 }
   0x5   :  { %15 = vsyncpa [#allocation4 + $0x1], 0  ;;  %s837_s9 = smov 0   ;;  %s839_s10 = smov 0  }
   0x6   :  { %s841_s11 = smov 0   ;;  %s843_s12 = smov 0  }
   0x7   :  { %s845_s13 = smov 0   ;;  %s847_s14 = smov 0  }
   0x8 LB: > { %s543_s15 = sadd.s32 4294967295, %s806_s14   ;;  %s544_s16 = sadd.s32 4294967294, %s806_s14   ;;  %s806_s14 = sphi %s847_s14, %s21_s14   ;;  %s802_s13 = sphi %s845_s13, %s1102_s13   ;;  %s798_s12 = sphi %s843_s12, %s1101_s12   ;;  %s794_s11 = sphi %s841_s11, %s1100_s11   ;;  %s790_s10 = sphi %s839_s10, %s1099_s10   ;;  %s786_s9 = sphi %s837_s9, %s1098_s9  }
   0x9   : > { %s33_s17 = sadd.s32 1, %s802_s13  ;;  %s40_s18 = sadd.s32 1, %s794_s11 }
   0xa   : > { %p35_p0 = scmp.ge.s32.totalorder %s33_s17, 2  ;;  %p47_p1 = scmp.ne.s32.totalorder %s794_s11, %s790_s10 }
   0xb   : > { %p48_p2 = scmp.eq.s32.totalorder %s806_s14, 0  ;;  %p53_p3 = scmp.ne.s32.totalorder %s790_s10, %s786_s9 }
   0xc   : > { %s1104_s17 = smov (%p35_p0, %s33_s17), 0  ;;  %p54_p5 = scmp.eq.s32.totalorder %s543_s15, 0 }
   0xd   : > { %p878_p4 = por %p48_p2, %p47_p1  ;;  %s37_s20 = ssub.s32 %s802_s13, %s1104_s17 }
   0xe   : > { %p105_p6 = scmp.eq.s32.totalorder %s543_s15, 1  ;;  %p38_p7 = scmp.eq.s32.totalorder %s37_s20, 0 }
   0xf   : > { %p884_p8 = por %p54_p5, %p53_p3  ;;  %p111_p10 = scmp.eq.s32.totalorder %s544_s16, 1 }
  0x10   : > { %p888_p9 = por %p105_p6, %p47_p1  ;;  %p599_p13 = scmp.lt.s32.totalorder %s806_s14, 2 }
  0x11   : > { %s1088_s21 = scalar_select %p884_p8, 1, 0 }
  0x12   : > { %s1089_s22 = scalar_select %p888_p9, 1, 0 }
  0x13   : > { %s893_s23 = scalar_select %p38_p7, %s794_s11, %s40_s18  }
  0x14   : > { %p895_p11 = por %p111_p10, %p53_p3  ;;  %s902_s25 = sand.u32 1, %s794_s11  }
  0x15   : > { %s547_s26 = sshll.u32 %s902_s25, 4  ;;  %s563_s27 = sshll.u32 %s802_s13, 8 }
  0x16   : > { %s1090_s24 = scalar_select %p895_p11, 1, 0 }
  0x17   : > { %s911_s30 = scalar_lea.hbm %s1082_s0, %s563_s27  ;;  %s135_s3 = scalar_lea.vmem [#allocation2], %s547_s26 }
  0x18   : > { %s142_s4 = sshll.u32 %s135_s3, 4  ;;  %p919_p0 = pnand %p599_p13, %p878_p4  ;;  %s915_s4 = int_to_ptr.vmem [resolvable:$true] %s142_s4 }
  0x19   : > { %s132_s6 = scalar_lea.sflag [#allocation3], %s902_s25  ;;  %s660_s7 = scalar_lea.hbm %s911_s30, 256 }
  0x1a   : > { %p661_p2 = scmp.ne.s32.totalorder %s911_s30, %s660_s7  ;;  %p662_p3 = pneg %p919_p0 }
  0x1b   : > { %s665_s16 = scalar_lea.hbm %s1082_s0, 512  ;;  %p666_p4 = scmp.lt.u32.totalorder %s911_s30, %s1082_s0 }
  0x1c   : > { %p663_p5 = pnand %p662_p3, %p661_p2  ;;  %p667_p7 = scmp.lt.u32.totalorder %s665_s16, %s660_s7 }
  0x1d   : > { %p669_p13 = scmp.lt.u32.totalorder %s660_s7, %s911_s30 }
  0x1e   : > { %p664_p6 = pneg %p663_p5  ;;  %p668_p10 = por %p667_p7, %p666_p4 }
  0x20   : > { %p670_p12 = por %p669_p13, %p668_p10 }
  0x22   : > { %p671_p1 = pnand %p670_p12, %p664_p6 }
  0x24   : > { %674 = shalt.err (!%p671_p1)
}
  0x25   : > { %s675_s20 = scalar_lea.vmem %s915_s4, 256  ;;  %s808_s28 = smov [#allocation2]  }
  0x26   : > { %p676_p2 = scmp.ne.s32.totalorder %s915_s4, %s675_s20  ;;  %s680_s29 = sshll.u32 %s808_s28, 4  ;;  %s681_s29 = int_to_ptr.vmem [resolvable:$false] %s680_s29 }
  0x27   : > { %s682_s3 = scalar_lea.vmem %s681_s29, 512  ;;  %p683_p9 = scmp.lt.s32.totalorder %s915_s4, %s681_s29 }
  0x28   : > { %p678_p5 = pnand %p676_p2, %p662_p3  ;;  %p684_p4 = scmp.lt.s32.totalorder %s682_s3, %s675_s20 }
  0x2a   : > { %p679_p11 = pneg %p678_p5  ;;  %p685_p7 = por %p684_p4, %p683_p9 }
  0x2c   : > { %p686_p10 = pnand %p685_p7, %p679_p11 }
  0x2e   : > { %689 = shalt.err (!%p686_p10)
}
  0x2f   : > { %s809_s7 = smov 128   ;;  %s810_s8 = smov 8  }
  0x30   : > { %591 = dma.hbm_to_vmem [thread:$0]  (!%p919_p0), %s911_s30, 256, %s915_s4, %s132_s6, %s809_s7, %s809_s7, %s810_s8  }
  0x31   : > { %p173_p9 = scmp.lt.s32.totalorder %s806_s14, 3  ;;  %s961_s18 = scalar_lea.hbm %s1083_s1, %s563_s27 }
  0x32   : > { %p1092_p11 = scmp.ge.s32.totalorder %s806_s14, 1  ;;  %s156_s20 = scalar_lea.vmem [#allocation5], %s547_s26 }
  0x33   : > { %s165_s28 = sshll.u32 %s156_s20, 4  ;;  %s153_s30 = scalar_lea.sflag [#allocation6], %s902_s25  ;;  %s971_s28 = int_to_ptr.vmem [resolvable:$true] %s165_s28 }
  0x34   : > { %p965_p12 = pnand %p1092_p11, %p173_p9  ;;  %s690_s4 = scalar_lea.hbm %s961_s18, 256 }
  0x35   : > { %p691_p1 = scmp.ne.s32.totalorder %s961_s18, %s690_s4  ;;  %s695_s29 = scalar_lea.hbm %s1083_s1, 512 }
  0x36   : > { %p696_p2 = scmp.lt.u32.totalorder %s961_s18, %s1083_s1  ;;  %p697_p5 = scmp.lt.u32.totalorder %s695_s29, %s690_s4 }
  0x37   : > { %p693_p6 = pnand %p691_p1, %p662_p3  ;;  %p699_p7 = scmp.lt.u32.totalorder %s690_s4, %s961_s18 }
  0x38   : > { %p698_p4 = por %p697_p5, %p696_p2 }
  0x39   : > { %p694_p13 = pneg %p693_p6 }
  0x3a   : > { %p700_p10 = por %p699_p7, %p698_p4 }
  0x3c   : > { %p701_p9 = pnand %p700_p10, %p694_p13 }
  0x3e   : > { %704 = shalt.err (!%p701_p9)
}
  0x3f   : > { %s705_s26 = scalar_lea.vmem %s971_s28, 256  ;;  %s811_s16 = smov [#allocation5]  }
  0x40   : > { %p706_p11 = scmp.ne.s32.totalorder %s971_s28, %s705_s26  ;;  %s710_s20 = sshll.u32 %s811_s16, 4  ;;  %s711_s20 = int_to_ptr.vmem [resolvable:$false] %s710_s20 }
  0x41   : > { %s712_s27 = scalar_lea.vmem %s711_s20, 512  ;;  %p713_p8 = scmp.lt.s32.totalorder %s971_s28, %s711_s20 }
  0x42   : > { %p708_p1 = pnand %p706_p11, %p662_p3  ;;  %p714_p2 = scmp.lt.s32.totalorder %s712_s27, %s705_s26 }
  0x44   : > { %p709_p6 = pneg %p708_p1  ;;  %p715_p5 = por %p714_p2, %p713_p8 }
  0x46   : > { %p716_p4 = pnand %p715_p5, %p709_p6 }
  0x48   : > { %719 = shalt.err (!%p716_p4)
}
  0x49   : > { %594 = dma.hbm_to_vmem [thread:$0]  (!%p919_p0), %s961_s18, 256, %s971_s28, %s153_s30, %s809_s7, %s809_s7, %s810_s8  }
  0x4a   : > { %177 = sbr.rel (%p965_p12) target bundleno = 811 (0x32b), region = 28  ;;  %s1005_s4 = sand.u32 (!%p965_p12), 1, %s790_s10  }
  0x4b   : > { %s554_s6 = sshll.u32 (!%p965_p12), %s1005_s4, 4  ;;  %s180_s29 = scalar_lea.sflag (!%p965_p12), [#allocation3], %s1005_s4 }
  0x4c   : > { %s183_s5 = scalar_lea.vmem (!%p965_p12), [#allocation2], %s554_s6  ;;  %p1094_p8 = scmp.ne.s32.totalorder (!%p965_p12), %s1088_s21, 0 }
  0x51   : > { %773 = dma.done.wait (%p1094_p8), %s180_s29, 256  }
  0x52   : > { %775 = vsyncadd (%p1094_p8), %s180_s29, 4294967040  ;;  %s189_s25 = scalar_lea.sflag [#allocation6], %s1005_s4  ;;  %s192_s7 = scalar_lea.vmem [#allocation5], %s554_s6 }
  0x53   : > { %777 = dma.done.wait (%p1094_p8), %s189_s25, 256  }
  0x54   : > { %779 = vsyncadd (%p1094_p8), %s189_s25, 4294967040  ;;  %vm222_vm0 = vcmask 261120   ;;  %v218_v0 = vld [vmem:[%s183_s5] sm:$0xff]  ;;  %v219_v1 = vld [vmem:[%s183_s5 + $0x8] sm:$0xff]  ;;  %s812_s8 = smov 127   ;;  %s813_s18 = smov 15   ;;  %v311_v7 = vlaneseq }
  0x55   : > { %vm577_vm1 = vmpackc.low %vm222_vm0, %vm222_vm0  ;;  %v220_v2 = vld [vmem:[%s192_s7] sm:$0xff]  ;;  %v576_v3 = vpack.c.bf16 %v219_v1, %v218_v0  ;;  %v221_v4 = vld [vmem:[%s192_s7 + $0x8] sm:$0xff]  ;;  %vm331_vm2 = vcmask 121856   ;;  %s814_s21 = smov 126   ;;  %s815_s19 = smov 14   ;;  %vm354_vm5 = vcmask 113664  }
  0x56   : > { %573 = vmatprep.mubr.msk.f32.mxu0 %vm222_vm0, %v220_v2  ;;  %v312_v8 = vshrl.u32 %v311_v7, 7  ;;  %s816_s28 = smov 12   ;;  %s817_s30 = smov 124   ;;  %vm377_vm8 = vcmask 97280   ;;  %vm424_vm10 = vcmask 122880   ;;  %v818_v33 = vmov 0.0  }
  0x57   : > { %578 = vmatprep.subr.msk.bf16.mxu0 %vm577_vm1, %v576_v3  ;;  %s1019_s3 = scalar_lea.vmem [#allocation7], %s1005_s4  ;;  %s819_s15 = smov 8   ;;  %vm400_vm12 = vcmask 64512   ;;  %vm409_vm13 = vcmask 130048  }
  0x58   : > { %581 = vmatpush3.bf16.xpose.msk.msra.mxu0 %vm577_vm1, %v576_v3  ;;  %v313_v9 = vadd.s32 8, %v312_v8  ;;  %v334_v13 = vand.u32 1, %v312_v8  ;;  %v357_v21 = vand.u32 2, %v312_v8  ;;  %425 = vst.msk [vmem:[%s1019_s3] sm:$0x1] %vm424_vm10, %v818_v33  ;;  %s820_s26 = smov 120  }
  0x59   : > { %v380_v36 = vand.u32 4, %v312_v8  ;;  %s560_s16 = sshll.u32 %s798_s12, 4  ;;  %s443_s20 = sshll.u32 %s1019_s3, 4  ;;  %s1033_s20 = int_to_ptr.vmem [resolvable:$true] %s443_s20 }
  0x5a   : > { %v335_v10 = vand.u32 1, %v313_v9  ;;  %vm336_vm4 = vcmp.ne.s32.totalorder %v334_v13, 0  ;;  %v358_v20 = vand.u32 2, %v313_v9  ;;  %vm359_vm7 = vcmp.ne.s32.totalorder %v357_v21, 0  ;;  %s1031_s29 = scalar_lea.hbm %s1084_s2, %s560_s16  ;;  %s431_s5 = scalar_lea.sflag [#allocation4], %s1005_s4 }
  0x5b   : > { %v381_v30 = vand.u32 4, %v313_v9  ;;  %vm382_vm11 = vcmp.ne.s32.totalorder %v380_v36, 0  ;;  %s720_s25 = scalar_lea.vmem %s1033_s20, 16  ;;  %p1095_p3 = scmp.ne.s32.totalorder %s1089_s22, 0 }
  0x5c   : > { %vm337_vm3 = vcmp.ne.s32.totalorder %v335_v10, 0  ;;  %vm360_vm6 = vcmp.ne.s32.totalorder %v358_v20, 0  ;;  %p721_p0 = scmp.ne.s32.totalorder %s1033_s20, %s720_s25  ;;  %s821_s12 = smov [#allocation7]  }
  0x5d   : > { %vm383_vm9 = vcmp.ne.s32.totalorder %v381_v30, 0  ;;  %s724_s7 = sshll.u32 %s821_s12, 4  ;;  %s725_s7 = int_to_ptr.vmem [resolvable:$false] %s724_s7 }
  0x5e   : > { %p722_p12 = pnand %p721_p0, %p1095_p3  ;;  %p727_p7 = scmp.lt.s32.totalorder %s1033_s20, %s725_s7 }
  0x5f   : > { %574 = vmatmul.mubr.msk.f32.vlgmr.msra.gmra.mrb[0].mxu0 %vm222_vm0, %v221_v4  ;;  %v426_v53 = vld [vmem:[%s1019_s3] sm:$0x1] }
  0x60   : > { %p723_p13 = pneg %p722_p12 }
 0x132   : > { %v575_v5 = vpop.f32.mrb[0].mxu0 }
 0x133   : > { %321 = vrot.lane.b32.xlu0 %v575_v5, %s812_s8  ;;  %v301_v6 = vpop.f32.mrb[1].mxu0 }
 0x134   : > { %319 = vrot.lane.b32.xlu1 %v301_v6, %s812_s8  ;;  %s726_s8 = scalar_lea.vmem %s725_s7, 32 }
 0x135   : > { %p728_p10 = scmp.lt.s32.totalorder %s726_s8, %s720_s25 }
 0x137   : > { %327 = vrot.lane.b32.xlu0 %v575_v5, %s813_s18  ;;  %p729_p9 = por %p728_p10, %p727_p7 }
 0x138   : > { %325 = vrot.lane.b32.xlu1 %v301_v6, %s813_s18 }
 0x139   : > { %p730_p11 = pnand %p729_p9, %p723_p13 }
 0x1a5   : > { %v322_v11 = vpop.permute.xlu0 %321 }
 0x1a6   : > { %v320_v12 = vpop.permute.xlu1 %319 }
 0x1a9   : > { %v328_v14 = vpop.permute.xlu0 %327 }
 0x1aa   : > { %v333_v15 = vsel %vm331_vm2, %v322_v11, %v328_v14  ;;  %v326_v16 = vpop.permute.xlu1 %325 }
 0x1ab   : > { %v339_v17 = vsel %vm337_vm3, %v333_v15, %v575_v5  ;;  %v332_v18 = vsel %vm331_vm2, %v320_v12, %v326_v16 }
 0x1ac   : > { %344 = vrot.lane.b32.xlu0 %v339_v17, %s814_s21  ;;  %350 = vrot.lane.b32.xlu1 %v339_v17, %s815_s19  ;;  %v338_v19 = vsel %vm336_vm4, %v332_v18, %v301_v6 }
 0x1b0   : > { %348 = vrot.lane.b32.xlu1 %v338_v19, %s815_s19  ;;  %342 = vrot.lane.b32.xlu0 %v338_v19, %s814_s21 }
 0x21e   : > { %v345_v22 = vpop.permute.xlu0 %344  ;;  %v351_v23 = vpop.permute.xlu1 %350 }
 0x21f   : > { %v356_v24 = vsel %vm354_vm5, %v345_v22, %v351_v23 }
 0x220   : > { %v362_v25 = vsel %vm360_vm6, %v356_v24, %v339_v17 }
 0x221   : > { %373 = vrot.lane.b32.xlu1 %v362_v25, %s816_s28  ;;  %367 = vrot.lane.b32.xlu0 %v362_v25, %s817_s30 }
 0x222   : > { %v343_v26 = vpop.permute.xlu0 %342  ;;  %v349_v27 = vpop.permute.xlu1 %348 }
 0x223   : > { %v355_v28 = vsel %vm354_vm5, %v343_v26, %v349_v27 }
 0x224   : > { %v361_v29 = vsel %vm359_vm7, %v355_v28, %v338_v19 }
 0x225   : > { %371 = vrot.lane.b32.xlu1 %v361_v29, %s816_s28  ;;  %365 = vrot.lane.b32.xlu0 %v361_v29, %s817_s30 }
 0x293   : > { %v368_v31 = vpop.permute.xlu0 %367  ;;  %v374_v32 = vpop.permute.xlu1 %373 }
 0x294   : > { %v379_v34 = vsel %vm377_vm8, %v368_v31, %v374_v32 }
 0x295   : > { %v385_v35 = vsel %vm383_vm9, %v379_v34, %v362_v25 }
 0x296   : > { %396 = vrot.lane.b32.xlu1 %v385_v35, %s819_s15  ;;  %390 = vrot.lane.b32.xlu0 %v385_v35, %s820_s26 }
 0x297   : > { %v366_v37 = vpop.permute.xlu0 %365  ;;  %v372_v38 = vpop.permute.xlu1 %371 }
 0x298   : > { %v378_v39 = vsel %vm377_vm8, %v366_v37, %v372_v38 }
 0x299   : > { %v384_v40 = vsel %vm382_vm11, %v378_v39, %v361_v29 }
 0x29a   : > { %v410_v44 = vsel %vm409_vm13, %v384_v40, 0.0 }
 0x308   : > { %v391_v41 = vpop.permute.xlu0 %390  ;;  %v397_v42 = vpop.permute.xlu1 %396 }
 0x309   : > { %v402_v43 = vsel %vm400_vm12, %v391_v41, %v397_v42 }
 0x30a   : > { %v411_v45 = vsel %vm409_vm13, %v402_v43, 0.0 }
 0x30b   : > { %v412_v46 = vadd.f32 %v411_v45, %v410_v44 }
 0x30d   : > { %v413_v47 = vrot.slane %v412_v46, 4 }
 0x30f   : > { %v414_v48 = vadd.f32 %v413_v47, %v412_v46 }
 0x311   : > { %v415_v49 = vrot.slane %v414_v48, 2 }
 0x313   : > { %v416_v50 = vadd.f32 %v415_v49, %v414_v48 }
 0x315   : > { %v417_v51 = vrot.slane %v416_v50, 1 }
 0x317   : > { %v418_v52 = vadd.f32 %v417_v51, %v416_v50 }
 0x319   : > { %v419_v54 = vmul.f32 0.03125, %v418_v52 }
 0x31b   : > { %v427_v55 = vadd.f32 %v426_v53, %v419_v54 }
 0x31d   : > { %429 = vst.msk [vmem:[%s1019_s3] sm:$0x1] %vm424_vm10, %v427_v55 }
 0x31e   : > { %733 = shalt.err (!%p730_p11)
}
 0x31f   : > { %s734_s4 = scalar_lea.hbm %s1031_s29, 16  ;;  %s738_s19 = scalar_lea.hbm %s1084_s2, 32 }
 0x320   : > { %p735_p1 = scmp.ne.s32.totalorder %s1031_s29, %s734_s4  ;;  %p739_p5 = scmp.lt.u32.totalorder %s1031_s29, %s1084_s2 }
 0x321   : > { %p740_p4 = scmp.lt.u32.totalorder %s738_s19, %s734_s4  ;;  %p742_p0 = scmp.lt.u32.totalorder %s734_s4, %s1031_s29 }
 0x322   : > { %p736_p6 = pnand %p735_p1, %p1095_p3 }
 0x323   : > { %p741_p8 = por %p740_p4, %p739_p5 }
 0x324   : > { %p737_p2 = pneg %p736_p6 }
 0x325   : > { %p743_p12 = por %p742_p0, %p741_p8 }
 0x327   : > { %p744_p13 = pnand %p743_p12, %p737_p2 }
 0x329   : > { %747 = shalt.err (!%p744_p13)
}
 0x32a   : > { %586 = dma.vmem_to_hbm [thread:$0]  (%p1095_p3), %s1033_s20, 16, %s1031_s29, %s431_s5  }
 0x32b PF: > { %s455_s3 = sand.u32 1, %s786_s9   ;;  %p1096_p7 = scmp.ne.s32.totalorder %s1090_s24, 0 }
 0x32c   : > { %p1097_p10 = scmp.ge.s32.totalorder %s806_s14, 2  ;;  %s456_s15 = scalar_lea.sflag [#allocation4], %s455_s3 }
 0x32e   : > { %p596_p9 = pnand %p1097_p10, %p1096_p7 }
 0x330   : > { %781 = dma.done.wait (!%p596_p9), %s456_s15, 16  }
 0x331   : > { %783 = vsyncadd (!%p596_p9), %s456_s15, 4294967280  ;;  %s21_s14 = sadd.s32 1, %s806_s14   ;;  %s1098_s9 = smov %s790_s10 }
 0x332   : > { %p18_p11 = scmp.ge.s32.totalorder %s21_s14, 4   ;;  %s1099_s10 = smov %s794_s11 }
 0x333   : > { %s1100_s11 = smov %s893_s23  ;;  %s1101_s12 = smov %s802_s13 }
 0x334   : > { %s1102_s13 = smov %s1104_s17  ;;  %20 = sbr.rel (!%p18_p11) target bundleno = 8 (0x8), region = 90 }
 0x33b   :  { %460 = vsyncpa [#allocation3], 1 }
 0x33c   :  { %462 = vsyncpa [#allocation3 + $0x1], 1 }
 0x33d   :  { %463 = vsyncpa [#allocation6], 1 }
 0x33e   :  { %465 = vsyncpa [#allocation6 + $0x1], 1 }
 0x33f   :  { %466 = vsyncpa [#allocation4], 1 }
 0x340   :  { %468 = vsyncpa [#allocation4 + $0x1], 1 }

</bundles_post_ra>
